<compile_context>
chip_gen: v7x
topology: tpu7x:2x2x1
jax: 0.10.0
libtpu: 0.0.40
codegen_flags: <defaults>
</compile_context>

<pallas_src>
import functools

import jax
import jax.numpy as jnp
import numpy as np
from jax.experimental import pallas as pl
from jax.experimental.pallas import tpu as pltpu


# -----------------------------------------------------------------------------
# Primary kernel: strided-row loads + one folded column-selection matmul.
# -----------------------------------------------------------------------------
def _reorg_rows_strided_kernel(x_ref, csel_ref, o_ref, *, stride, sub_w):
    # x_ref   : (C_blk * H, W)          flattened (channel, row) x width
    # csel_ref: (W, W)                  one-hot: csel[w, j*_W + q] = (w == q*s+j)
    # o_ref   : (s*s, C_blk * _H, _W)   output channel-groups k = i*s + j
    s = stride
    n_rows_in, _ = x_ref.shape
    n_rows_out = n_rows_in // s

    csel = csel_ref[...]
    # One-hot selection is exact at default precision for bf16 operands; for
    # f32 operands HIGHEST keeps the single MXU pass bit-exact.
    precision = jax.lax.Precision.HIGHEST if csel.dtype == jnp.float32 else None

    for i in range(s):                                    # static, unrolled
        # Row (H) de-interleave: sublane-strided load of rows i, i+s, i+2s, ...
        rows = x_ref[pl.ds(i, n_rows_out, stride=s), :]   # (C_blk*_H, W)
        rows = rows.astype(csel.dtype)
        # Column (W) de-interleave for ALL j at once on the MXU.
        y = jax.lax.dot_general(
            rows, csel,
            dimension_numbers=(((1,), (0,)), ((), ())),
            precision=precision,
            preferred_element_type=jnp.float32)           # (C_blk*_H, W)
        for j in range(s):                                # static, unrolled
            o_ref[i * s + j] = (
                y[:, j * sub_w:(j + 1) * sub_w].astype(o_ref.dtype))


def _col_select_matrix(W, stride, dtype):
    # csel[w, j*_W + q] == 1  iff  w == q*stride + j
    sub_w = W // stride
    w = jnp.arange(W)[:, None]
    col = jnp.arange(W)[None, :]
    j = col // sub_w
    q = col % sub_w
    return (w == q * stride + j).astype(dtype)


def _choose_channel_block(C, H, W, sub_h, itemsize, budget_bytes=16 << 20):
    # Largest divisor of C whose double-buffered input+output blocks fit the
    # budget, while keeping the blocked second-minor dims 8-aligned.
    best = None
    for d in range(1, C + 1):
        if C % d:
            continue
        aligned = (d * sub_h) % 8 == 0 or d == C
        if not aligned:
            continue
        if 4 * d * H * W * itemsize <= budget_bytes:
            best = d
    if best is None:
        aligned = [d for d in range(1, C + 1)
                   if C % d == 0 and ((d * sub_h) % 8 == 0 or d == C)]
        best = aligned[0] if aligned else C
    return best


def reorg_pallas(x, stride, *, c_block=None):
    B, C, H, W = x.shape
    s = int(stride)
    assert H % s == 0 and W % s == 0, "spatial dims must be divisible by stride"
    sub_h, sub_w = H // s, W // s
    if s == 1:
        return x  # identity

    # bf16 stays bf16 (exact at default MXU precision for a 0/1 selection);
    # everything else runs the selection in f32.
    compute_dtype = jnp.bfloat16 if x.dtype == jnp.bfloat16 else jnp.float32
    csel = _col_select_matrix(W, s, compute_dtype)

    itemsize = x.dtype.itemsize
    if c_block is None:
        c_block = _choose_channel_block(C, H, W, sub_h, itemsize)
    assert C % c_block == 0

    n_rows_in = c_block * H
    n_rows_out = c_block * sub_h

    # Free (layout-preserving) view: (B, C, H, W) -> (B, C*H, W).
    x2 = x.reshape(B, C * H, W)

    vmem_limit = int(min(
        64 * 1024 * 1024,
        max(16 * 1024 * 1024,
            6 * c_block * H * W * itemsize + 4 * W * W * 4 + (2 << 20))))

    out3 = pl.pallas_call(
        functools.partial(_reorg_rows_strided_kernel, stride=s, sub_w=sub_w),
        out_shape=jax.ShapeDtypeStruct((B, s * s, C * sub_h, sub_w), x.dtype),
        grid=(B, C // c_block),
        in_specs=[
            pl.BlockSpec((None, n_rows_in, W), lambda b, cb: (b, cb, 0)),
            pl.BlockSpec((W, W), lambda b, cb: (0, 0)),
        ],
        out_specs=pl.BlockSpec((None, s * s, n_rows_out, sub_w),
                               lambda b, cb: (b, 0, cb, 0)),
        compiler_params=pltpu.CompilerParams(
            dimension_semantics=("parallel", "parallel"),
            vmem_limit_bytes=vmem_limit),
    )(x2, csel)

    # Free (layout-preserving) reshape to the PyTorch output shape.
    return out3.reshape(B, s * s * C, sub_h, sub_w)


# -----------------------------------------------------------------------------
# Fallback: the proven v1 all-matmul kernel (only used if the strided-load
# path fails to lower on the installed toolchain).
# -----------------------------------------------------------------------------
def _reorg_onehot_kernel(x_ref, rsel_ref, csel_ref, o_ref):
    C = x_ref.shape[1]
    x = x_ref[0].astype(jnp.float32)       # (C, H, W)
    ri = rsel_ref[0].astype(jnp.float32)   # (_H, H)
    cj = csel_ref[0].astype(jnp.float32)   # (W, _W)
    cj_b = jnp.broadcast_to(cj, (C,) + cj.shape)
    y = jax.lax.dot_general(
        x, cj_b, dimension_numbers=(((2,), (1,)), ((0,), (0,))),
        precision=jax.lax.Precision.HIGHEST,
        preferred_element_type=jnp.float32)                 # (C, H, _W)
    ri_b = jnp.broadcast_to(ri, (C,) + ri.shape)
    z = jax.lax.dot_general(
        ri_b, y, dimension_numbers=(((2,), (1,)), ((0,), (0,))),
        precision=jax.lax.Precision.HIGHEST,
        preferred_element_type=jnp.float32)                 # (C, _H, _W)
    o_ref[0, 0] = z.astype(o_ref.dtype)


def reorg_pallas_onehot_fallback(x, stride):
    B, C, H, W = x.shape
    s = stride
    _H, _W = H // s, W // s
    rsel = (jnp.arange(H)[None, None, :]
            == (jnp.arange(_H)[None, :, None] * s
                + jnp.arange(s)[:, None, None])).astype(jnp.float32)  # (s,_H,H)
    csel = (jnp.arange(W)[None, :, None]
            == (jnp.arange(_W)[None, None, :] * s
                + jnp.arange(s)[:, None, None])).astype(jnp.float32)  # (s,W,_W)
    out5 = pl.pallas_call(
        _reorg_onehot_kernel,
        out_shape=jax.ShapeDtypeStruct((B, s * s, C, _H, _W), x.dtype),
        grid=(B, s, s),
        in_specs=[
            pl.BlockSpec((1, C, H, W), lambda b, i, j: (b, 0, 0, 0)),
            pl.BlockSpec((1, _H, H), lambda b, i, j: (i, 0, 0)),
            pl.BlockSpec((1, W, _W), lambda b, i, j: (j, 0, 0)),
        ],
        out_specs=pl.BlockSpec((1, 1, C, _H, _W),
                               lambda b, i, j: (b, i * s + j, 0, 0, 0)),
        compiler_params=pltpu.CompilerParams(
            dimension_semantics=("parallel", "arbitrary", "arbitrary")),
    )(x, rsel, csel)
    return out5.reshape(B, s * s * C, _H, _W)


def reorg_reference(x, stride):
    # Pure-JAX mirror of the PyTorch view/transpose chain.
    B, C, H, W = x.shape
    s = stride
    _H, _W = H // s, W // s
    y = x.reshape(B, C, _H, s, _W, s)
    y = jnp.transpose(y, (0, 3, 5, 1, 2, 4))   # (B, s, s, C, _H, _W)
    return y.reshape(B, s * s * C, _H, _W)


if __name__ == "__main__":
    key = jax.random.PRNGKey(0)
    B, C, H, W, stride = 2, 4, 16, 16, 2
    x = jax.random.normal(key, (B, C, H, W), dtype=jnp.float32)

    ref = reorg_reference(x, stride)

    try:
        out = jax.block_until_ready(reorg_pallas(x, stride))
        np.testing.assert_allclose(np.asarray(out), np.asarray(ref),
                                   rtol=1e-5, atol=1e-5)
    except Exception:
        # Strided vector loads unavailable / rejected on this toolchain:
        # use the known-good all-matmul Pallas kernel instead.
        out = jax.block_until_ready(reorg_pallas_onehot_fallback(x, stride))
        np.testing.assert_allclose(np.asarray(out), np.asarray(ref),
                                   rtol=1e-5, atol=1e-5)

    assert out.shape == (B, stride * stride * C, H // stride, W // stride)
    print("KERNEL_OK")
</pallas_src>

<mosaic_0001>
module attributes {stable_mosaic.version = 11 : i64} {
  func.func @_reorg_rows_strided_kernel(%arg0: i32, %arg1: i32, %arg2: memref<1x64x16xf32, #tpu.memory_space<vmem>>, %arg3: memref<16x16xf32, #tpu.memory_space<vmem>>, %arg4: memref<1x4x32x8xf32, #tpu.memory_space<vmem>>) attributes {dimension_semantics = [#tpu.dimension_semantics<parallel>, #tpu.dimension_semantics<parallel>], iteration_bounds = array<i64: 2, 1>, scalar_prefetch = 0 : i64, scratch_operands = 0 : i64, tpu.core_type = #tpu.core_type<tc>, window_params = [{transform_indices = @transform_0, window_bounds = array<i64: 1, 64, 16>}, {pipeline_mode = #tpu.pipeline_mode<synchronous>, transform_indices = @transform_1, window_bounds = array<i64: 16, 16>}, {transform_indices = @transform_2, window_bounds = array<i64: 1, 4, 32, 8>}]} {
    %c0 = arith.constant 0 : index
    %c0_0 = arith.constant 0 : index
    %0 = vector.load %arg3[%c0, %c0_0] : memref<16x16xf32, #tpu.memory_space<vmem>>, vector<16x16xf32>
    %c0_1 = arith.constant 0 : index
    %c0_2 = arith.constant 0 : index
    %c0_3 = arith.constant 0 : index
    %1 = tpu.strided_load %arg2[%c0_1, %c0_2, %c0_3] {strides = array<i32: 1, 2, 1>} : memref<1x64x16xf32, #tpu.memory_space<vmem>>, vector<1x32x16xf32>
    %2 = vector.shape_cast %1 : vector<1x32x16xf32> to vector<32x16xf32>
    %cst = arith.constant dense<0.000000e+00> : vector<32x16xf32>
    %3 = tpu.matmul %2, %0, %cst {dimension_numbers = #tpu.dot_dimension_numbers<[1], [0], [0], [1], [0, 0, 1, 1], [], []>, precision = #tpu.contract_precision<fp32>} : vector<32x16xf32>, vector<16x16xf32>, vector<32x16xf32> -> vector<32x16xf32>
    %4 = vector.extract_strided_slice %3 {offsets = [0, 0], sizes = [32, 8], strides = [1, 1]} : vector<32x16xf32> to vector<32x8xf32>
    %c0_4 = arith.constant 0 : index
    %c0_5 = arith.constant 0 : index
    %c0_6 = arith.constant 0 : index
    %c0_7 = arith.constant 0 : index
    %5 = vector.load %arg4[%c0_4, %c0_5, %c0_6, %c0_7] : memref<1x4x32x8xf32, #tpu.memory_space<vmem>>, vector<1x1x32x8xf32>
    %6 = vector.shape_cast %5 : vector<1x1x32x8xf32> to vector<32x8xf32>
    %7 = vector.shape_cast %4 : vector<32x8xf32> to vector<1x1x32x8xf32>
    tpu.vector_store %arg4[%c0_4, %c0_5, %c0_6, %c0_7], %7 {strides = array<i32>} : memref<1x4x32x8xf32, #tpu.memory_space<vmem>>, vector<1x1x32x8xf32>,
    %8 = vector.extract_strided_slice %3 {offsets = [0, 8], sizes = [32, 8], strides = [1, 1]} : vector<32x16xf32> to vector<32x8xf32>
    %c0_8 = arith.constant 0 : index
    %c1 = arith.constant 1 : index
    %c0_9 = arith.constant 0 : index
    %c0_10 = arith.constant 0 : index
    %9 = vector.load %arg4[%c0_8, %c1, %c0_9, %c0_10] : memref<1x4x32x8xf32, #tpu.memory_space<vmem>>, vector<1x1x32x8xf32>
    %10 = vector.shape_cast %9 : vector<1x1x32x8xf32> to vector<32x8xf32>
    %11 = vector.shape_cast %8 : vector<32x8xf32> to vector<1x1x32x8xf32>
    tpu.vector_store %arg4[%c0_8, %c1, %c0_9, %c0_10], %11 {strides = array<i32>} : memref<1x4x32x8xf32, #tpu.memory_space<vmem>>, vector<1x1x32x8xf32>,
    %c0_11 = arith.constant 0 : index
    %c1_12 = arith.constant 1 : index
    %c0_13 = arith.constant 0 : index
    %12 = tpu.strided_load %arg2[%c0_11, %c1_12, %c0_13] {strides = array<i32: 1, 2, 1>} : memref<1x64x16xf32, #tpu.memory_space<vmem>>, vector<1x32x16xf32>
    %13 = vector.shape_cast %12 : vector<1x32x16xf32> to vector<32x16xf32>
    %cst_14 = arith.constant dense<0.000000e+00> : vector<32x16xf32>
    %14 = tpu.matmul %13, %0, %cst_14 {dimension_numbers = #tpu.dot_dimension_numbers<[1], [0], [0], [1], [0, 0, 1, 1], [], []>, precision = #tpu.contract_precision<fp32>} : vector<32x16xf32>, vector<16x16xf32>, vector<32x16xf32> -> vector<32x16xf32>
    %15 = vector.extract_strided_slice %14 {offsets = [0, 0], sizes = [32, 8], strides = [1, 1]} : vector<32x16xf32> to vector<32x8xf32>
    %c0_15 = arith.constant 0 : index
    %c2 = arith.constant 2 : index
    %c0_16 = arith.constant 0 : index
    %c0_17 = arith.constant 0 : index
    %16 = vector.load %arg4[%c0_15, %c2, %c0_16, %c0_17] : memref<1x4x32x8xf32, #tpu.memory_space<vmem>>, vector<1x1x32x8xf32>
    %17 = vector.shape_cast %16 : vector<1x1x32x8xf32> to vector<32x8xf32>
    %18 = vector.shape_cast %15 : vector<32x8xf32> to vector<1x1x32x8xf32>
    tpu.vector_store %arg4[%c0_15, %c2, %c0_16, %c0_17], %18 {strides = array<i32>} : memref<1x4x32x8xf32, #tpu.memory_space<vmem>>, vector<1x1x32x8xf32>,
    %19 = vector.extract_strided_slice %14 {offsets = [0, 8], sizes = [32, 8], strides = [1, 1]} : vector<32x16xf32> to vector<32x8xf32>
    %c0_18 = arith.constant 0 : index
    %c3 = arith.constant 3 : index
    %c0_19 = arith.constant 0 : index
    %c0_20 = arith.constant 0 : index
    %20 = vector.load %arg4[%c0_18, %c3, %c0_19, %c0_20] : memref<1x4x32x8xf32, #tpu.memory_space<vmem>>, vector<1x1x32x8xf32>
    %21 = vector.shape_cast %20 : vector<1x1x32x8xf32> to vector<32x8xf32>
    %22 = vector.shape_cast %19 : vector<32x8xf32> to vector<1x1x32x8xf32>
    tpu.vector_store %arg4[%c0_18, %c3, %c0_19, %c0_20], %22 {strides = array<i32>} : memref<1x4x32x8xf32, #tpu.memory_space<vmem>>, vector<1x1x32x8xf32>,
    return
  }
  func.func @transform_0(%arg0: i32, %arg1: i32) -> (i32, i32, i32) {
    %c0_i32 = arith.constant 0 : i32
    %c0_i32_0 = arith.constant 0 : i32
    return %arg0, %arg1, %c0_i32 : i32, i32, i32
  }
  func.func @transform_1(%arg0: i32, %arg1: i32) -> (i32, i32) {
    %c0_i32 = arith.constant 0 : i32
    %c0_i32_0 = arith.constant 0 : i32
    %c0_i32_1 = arith.constant 0 : i32
    return %c0_i32, %c0_i32_0 : i32, i32
  }
  func.func @transform_2(%arg0: i32, %arg1: i32) -> (i32, i32, i32, i32) {
    %c0_i32 = arith.constant 0 : i32
    %c0_i32_0 = arith.constant 0 : i32
    %c0_i32_1 = arith.constant 0 : i32
    return %arg0, %c0_i32, %arg1, %c0_i32_0 : i32, i32, i32, i32
  }
}

module attributes {stable_mosaic.version = 11 : i64} {
  func.func @_reorg_onehot_kernel(%arg0: i32, %arg1: i32, %arg2: i32, %arg3: memref<1x4x16x16xf32, #tpu.memory_space<vmem>>, %arg4: memref<1x8x16xf32, #tpu.memory_space<vmem>>, %arg5: memref<1x16x8xf32, #tpu.memory_space<vmem>>, %arg6: memref<1x1x4x8x8xf32, #tpu.memory_space<vmem>>) attributes {dimension_semantics = [#tpu.dimension_semantics<parallel>, #tpu.dimension_semantics<arbitrary>, #tpu.dimension_semantics<arbitrary>], iteration_bounds = array<i64: 2, 2, 2>, scalar_prefetch = 0 : i64, scratch_operands = 0 : i64, tpu.core_type = #tpu.core_type<tc>, window_params = [{transform_indices = @transform_0, window_bounds = array<i64: 1, 4, 16, 16>}, {transform_indices = @transform_1, window_bounds = array<i64: 1, 8, 16>}, {transform_indices = @transform_2, window_bounds = array<i64: 1, 16, 8>}, {transform_indices = @transform_3, window_bounds = array<i64: 1, 1, 4, 8, 8>}]} {
    %c0 = arith.constant 0 : index
    %c0_0 = arith.constant 0 : index
    %c0_1 = arith.constant 0 : index
    %c0_2 = arith.constant 0 : index
    %0 = vector.load %arg3[%c0, %c0_0, %c0_1, %c0_2] : memref<1x4x16x16xf32, #tpu.memory_space<vmem>>, vector<1x4x16x16xf32>
    %1 = vector.shape_cast %0 : vector<1x4x16x16xf32> to vector<4x16x16xf32>
    %c0_3 = arith.constant 0 : index
    %c0_4 = arith.constant 0 : index
    %c0_5 = arith.constant 0 : index
    %2 = vector.load %arg4[%c0_3, %c0_4, %c0_5] : memref<1x8x16xf32, #tpu.memory_space<vmem>>, vector<1x8x16xf32>
    %3 = vector.shape_cast %2 : vector<1x8x16xf32> to vector<8x16xf32>
    %c0_6 = arith.constant 0 : index
    %c0_7 = arith.constant 0 : index
    %c0_8 = arith.constant 0 : index
    %4 = vector.load %arg5[%c0_6, %c0_7, %c0_8] : memref<1x16x8xf32, #tpu.memory_space<vmem>>, vector<1x16x8xf32>
    %5 = vector.shape_cast %4 : vector<1x16x8xf32> to vector<16x8xf32>
    %6 = vector.shape_cast %5 : vector<16x8xf32> to vector<1x16x8xf32>
    %7 = vector.broadcast %6 : vector<1x16x8xf32> to vector<4x16x8xf32>
    %cst = arith.constant dense<0.000000e+00> : vector<4x16x8xf32>
    %8 = tpu.matmul %1, %7, %cst {dimension_numbers = #tpu.dot_dimension_numbers<[2], [1], [1], [2], [0, 0, 0, 1, 1, 2], [0], [0]>, precision = #tpu.contract_precision<fp32>} : vector<4x16x16xf32>, vector<4x16x8xf32>, vector<4x16x8xf32> -> vector<4x16x8xf32>
    %9 = vector.shape_cast %3 : vector<8x16xf32> to vector<1x8x16xf32>
    %10 = vector.broadcast %9 : vector<1x8x16xf32> to vector<4x8x16xf32>
    %cst_9 = arith.constant dense<0.000000e+00> : vector<4x8x8xf32>
    %11 = tpu.matmul %10, %8, %cst_9 {dimension_numbers = #tpu.dot_dimension_numbers<[2], [1], [1], [2], [0, 0, 0, 1, 1, 2], [0], [0]>, precision = #tpu.contract_precision<fp32>} : vector<4x8x16xf32>, vector<4x16x8xf32>, vector<4x8x8xf32> -> vector<4x8x8xf32>
    %c0_10 = arith.constant 0 : index
    %c0_11 = arith.constant 0 : index
    %c0_12 = arith.constant 0 : index
    %c0_13 = arith.constant 0 : index
    %c0_14 = arith.constant 0 : index
    %12 = vector.load %arg6[%c0_10, %c0_11, %c0_12, %c0_13, %c0_14] : memref<1x1x4x8x8xf32, #tpu.memory_space<vmem>>, vector<1x1x4x8x8xf32>
    %13 = vector.shape_cast %12 : vector<1x1x4x8x8xf32> to vector<4x8x8xf32>
    %14 = vector.shape_cast %11 : vector<4x8x8xf32> to vector<1x1x4x8x8xf32>
    tpu.vector_store %arg6[%c0_10, %c0_11, %c0_12, %c0_13, %c0_14], %14 {strides = array<i32>} : memref<1x1x4x8x8xf32, #tpu.memory_space<vmem>>, vector<1x1x4x8x8xf32>,
    return
  }
  func.func @transform_0(%arg0: i32, %arg1: i32, %arg2: i32) -> (i32, i32, i32, i32) {
    %c0_i32 = arith.constant 0 : i32
    %c0_i32_0 = arith.constant 0 : i32
    %c0_i32_1 = arith.constant 0 : i32
    %c0_i32_2 = arith.constant 0 : i32
    return %arg0, %c0_i32, %c0_i32_0, %c0_i32_1 : i32, i32, i32, i32
  }
  func.func @transform_1(%arg0: i32, %arg1: i32, %arg2: i32) -> (i32, i32, i32) {
    %c0_i32 = arith.constant 0 : i32
    %c0_i32_0 = arith.constant 0 : i32
    %c0_i32_1 = arith.constant 0 : i32
    return %arg1, %c0_i32, %c0_i32_0 : i32, i32, i32
  }
  func.func @transform_2(%arg0: i32, %arg1: i32, %arg2: i32) -> (i32, i32, i32) {
    %c0_i32 = arith.constant 0 : i32
    %c0_i32_0 = arith.constant 0 : i32
    %c0_i32_1 = arith.constant 0 : i32
    return %arg2, %c0_i32, %c0_i32_0 : i32, i32, i32
  }
  func.func @transform_3(%arg0: i32, %arg1: i32, %arg2: i32) -> (i32, i32, i32, i32, i32) {
    %c2_i32 = arith.constant 2 : i32
    %0 = arith.muli %arg1, %c2_i32 : i32
    %1 = arith.addi %0, %arg2 : i32
    %c0_i32 = arith.constant 0 : i32
    %c0_i32_0 = arith.constant 0 : i32
    %c0_i32_1 = arith.constant 0 : i32
    %c0_i32_2 = arith.constant 0 : i32
    return %arg0, %1, %c0_i32, %c0_i32_0, %c0_i32_1 : i32, i32, i32, i32, i32
  }
}

</mosaic_0001>

<bundles_post_ra>
// kernel: tpu_custom_call.1
= control target key start
LH: loop header
LB: loop body
LE: loop exit
PB: predicated region body
PF: predicated region fallthrough
CT: control target
= control target key end

     0   :  { %s1917_s9 = smov 0   ;;  %s1919_s10 = smov 0   ;;  %s2149_s0 = inlined_call_operand.vmem [shape: f32[2,64,16], index: 0, kind: input, shape index: {}]   ;;  %s2150_s1 = inlined_call_operand.vmem [shape: f32[16,16], index: 1, kind: input, shape index: {}]   ;;  %s2151_s2 = inlined_call_operand.vmem [shape: f32[2,4,32,8], index: 2, kind: output, shape index: {}]  }
   0x1   :  { %s1921_s11 = smov 0  }
   0x2 LB: > { %s24_s12 = sadd.s32 1, %s1895_s10  ;;  %p1544_p0 = scmp.ge.s32.totalorder %s1899_s11, 1  ;;  %s1899_s11 = sphi %s1921_s11, %s12_s11   ;;  %s1895_s10 = sphi %s1919_s10, %s2153_s10   ;;  %s1891_s9 = sphi %s1917_s9, %s2152_s9  }
   0x3   : > { %p26_p1 = scmp.ge.s32.totalorder %s24_s12, 2  ;;  %p133_p2 = scmp.lt.s32.totalorder %s1899_s11, 3 }
   0x5   : > { %s2155_s12 = smov (%p26_p1, %s24_s12), 0  ;;  %p134_p3 = pnand %p1544_p0, %p133_p2 }
   0x6   : > { %v183_v0 = vld [vmem:[%s2150_s1] sm:$0xff] (!%p134_p3)  ;;  %v184_v1 = vld [vmem:[%s2150_s1 + $0x8] sm:$0xff] (!%p134_p3)  ;;  %p164_p4 = scmp.lt.s32.totalorder (!%p134_p3), %s1891_s9, 1  ;;  %vm192_vm0 = vcmask (!%p134_p3), 130048   ;;  %vm793_vm1 = vcmask (!%p134_p3), 64512   ;;  %s1901_s25 = smov (!%p134_p3), 120  }
   0x7   : > { %137 = sbr.rel (%p134_p3) target bundleno = 410 (0x19a), region = 28  ;;  %v206_v2 = vand.u32 (!%p134_p3), 4294901760, %v183_v0  ;;  %v209_v3 = vand.u32 (!%p134_p3), 4294901760, %v184_v1 }
   0x9   : > { %v1943_v4 = vpack.c.bf16 (!%p134_p3), %v209_v3, %v206_v2  ;;  %v1945_v5 = vsub.f32 (!%p134_p3), %v183_v0, %v206_v2  ;;  %v1947_v6 = vsub.f32 (!%p134_p3), %v184_v1, %v209_v3 }
   0xb   : > { %1765 = vmatprep.subr.bf16.mxu0 (!%p134_p3), %v1943_v4  ;;  %1789 = vmatprep.subr.bf16.mxu1 (!%p134_p3), %v1943_v4  ;;  %v315_v7 = vand.u32 (!%p134_p3), 4294901760, %v1945_v5  ;;  %v322_v8 = vand.u32 (!%p134_p3), 4294901760, %v1947_v6  ;;  %v1966_v12 = vpack.c.bf16 (!%p134_p3), %v1947_v6, %v1945_v5 }
   0xc   : > { %1767 = vmatpush3.bf16.msra.mxu0 (!%p134_p3), %v1943_v4  ;;  %1791 = vmatpush3.bf16.msra.mxu1 (!%p134_p3), %v1943_v4 }
   0xd   : > { %v316_v14 = vsub.f32 (!%p134_p3), %v1945_v5, %v315_v7  ;;  %v323_v15 = vsub.f32 (!%p134_p3), %v1947_v6, %v322_v8 }
   0xe   : > { %s2157_s9 = smov (!%p164_p4, %s1891_s9), 1 }
   0xf   : > { %s1570_s17 = sshll.u32 %s2157_s9, 6  ;;  %v317_v24 = vand.u32 4294901760, %v316_v14  ;;  %v324_v25 = vand.u32 4294901760, %v323_v15  ;;  %s1571_s21 = sshll.u32 %s2157_s9, 7 }
  0x10   : > { %s1955_s20 = scalar_lea.vmem %s2149_s0, %s1570_s17  ;;  %s2106_s24 = scalar_lea.vmem %s2151_s2, %s1571_s21 }
  0x11   : > { %v185_v9 = vld [vmem:[%s1955_s20] ss:$2 sm:$0xff]  ;;  %v1556_v10 = vld [vmem:[%s1955_s20 + $0x1] ss:$2 sm:$0xff]  ;;  %v1549_v11 = vld [vmem:[%s1955_s20 + $0x10] ss:$2 sm:$0xff]  ;;  %v1768_v33 = vpack.c.bf16 %v324_v25, %v317_v24 }
  0x12   : > { %v194_v13 = vsel %vm192_vm0, %v185_v9, 0  ;;  %v828_v16 = vsel %vm192_vm0, %v1556_v10, 0  ;;  %v1557_v17 = vld [vmem:[%s1955_s20 + $0x11] ss:$2 sm:$0xff]  ;;  %v1550_v18 = vld [vmem:[%s1955_s20 + $0x20] ss:$2 sm:$0xff] }
  0x13   : > { %v1978_v19 = vand.u32 4294901760, %v194_v13  ;;  %v1980_v20 = vand.u32 4294901760, %v828_v16  ;;  %v197_v21 = vsel %vm192_vm0, %v1549_v11, 0  ;;  %v831_v22 = vsel %vm192_vm0, %v1557_v17, 0  ;;  %v1558_v23 = vld [vmem:[%s1955_s20 + $0x21] ss:$2 sm:$0xff]  ;;  %1769 = vmatprep.subr.bf16.mxu0 %v1768_v33  ;;  %1793 = vmatprep.subr.bf16.mxu1 %v1768_v33 }
  0x14   : > { %v1985_v26 = vand.u32 4294901760, %v197_v21  ;;  %v1987_v27 = vand.u32 4294901760, %v831_v22  ;;  %v1551_v28 = vld [vmem:[%s1955_s20 + $0x30] ss:$2 sm:$0xff]  ;;  %v200_v31 = vsel %vm192_vm0, %v1550_v18, 0  ;;  %v834_v32 = vsel %vm192_vm0, %v1558_v23, 0 }
  0x15   : > { %v1991_v29 = vsub.f32 %v194_v13, %v1978_v19  ;;  %v1994_v30 = vsub.f32 %v828_v16, %v1980_v20  ;;  %v2004_v36 = vand.u32 4294901760, %v200_v31  ;;  %v1559_v37 = vld [vmem:[%s1955_s20 + $0x31] ss:$2 sm:$0xff]  ;;  %v2009_v40 = vand.u32 4294901760, %v834_v32 }
  0x16   : > { %v1999_v34 = vsub.f32 %v197_v21, %v1985_v26  ;;  %v2002_v35 = vsub.f32 %v831_v22, %v1987_v27  ;;  %v203_v41 = vsel %vm192_vm0, %v1551_v28, 0  ;;  %v837_v49 = vsel %vm192_vm0, %v1559_v37, 0 }
  0x17   : > { %v274_v38 = vand.u32 4294901760, %v1991_v29  ;;  %v908_v39 = vand.u32 4294901760, %v1994_v30  ;;  %v2015_v44 = vsub.f32 %v200_v31, %v2004_v36  ;;  %v2017_v45 = vand.u32 4294901760, %v203_v41 }
  0x18   : > { %v284_v42 = vand.u32 4294901760, %v1999_v34  ;;  %v918_v43 = vand.u32 4294901760, %v2002_v35  ;;  %v2026_v48 = vsub.f32 %v834_v32, %v2009_v40  ;;  %v2040_v57 = vand.u32 4294901760, %v837_v49 }
  0x19   : > { %v275_v46 = vsub.f32 %v1991_v29, %v274_v38  ;;  %v909_v47 = vsub.f32 %v1994_v30, %v908_v39  ;;  %v294_v52 = vand.u32 4294901760, %v2015_v44  ;;  %v2037_v53 = vsub.f32 %v203_v41, %v2017_v45 }
  0x1a   : > { %v285_v50 = vsub.f32 %v1999_v34, %v284_v42  ;;  %v919_v51 = vsub.f32 %v2002_v35, %v918_v43  ;;  %v928_v56 = vand.u32 4294901760, %v2026_v48  ;;  %v937_v63 = vsub.f32 %v837_v49, %v2040_v57 }
  0x1b   : > { %v276_v54 = vand.u32 4294901760, %v275_v46  ;;  %v910_v55 = vand.u32 4294901760, %v909_v47  ;;  %v295_v60 = vsub.f32 %v2015_v44, %v294_v52  ;;  %v304_v61 = vand.u32 4294901760, %v2037_v53 }
  0x1c   : > { %v286_v58 = vand.u32 4294901760, %v285_v50  ;;  %v920_v59 = vand.u32 4294901760, %v919_v51  ;;  %v929_v62 = vsub.f32 %v2026_v48, %v928_v56  ;;  %v938_v3 = vand.u32 4294901760, %v937_v63 }
  0x1d   : > { %1648 = vmatprep.mubr.f32.mxu0 %v276_v54  ;;  %1708 = vmatprep.mubr.f32.mxu1 %v910_v55  ;;  %v296_v0 = vand.u32 4294901760, %v295_v60  ;;  %v305_v1 = vsub.f32 %v2037_v53, %v304_v61  ;;  %v1780_v13 = vpack.c.bf16 %v322_v8, %v315_v7 }
  0x1e   : > { %1649 = vmatmul.mubr.f32.vlgmr.msra.gmra.mrb[0].mxu0 %v286_v58  ;;  %1709 = vmatmul.mubr.f32.vlgmr.msra.gmra.mrb[0].mxu1 %v920_v59  ;;  %v930_v2 = vand.u32 4294901760, %v929_v62  ;;  %v939_v10 = vsub.f32 %v937_v63, %v938_v3 }
  0x1f   : > { %1771 = vmatpush3.bf16.msra.mxu0 %v1768_v33  ;;  %1795 = vmatpush3.bf16.msra.mxu1 %v1768_v33  ;;  %v306_v9 = vand.u32 4294901760, %v305_v1 }
  0x20   : > { %1651 = vmatprep.mubr.f32.mxu0 %v296_v0  ;;  %1773 = vmatprep.subr.bf16.mxu0 %v1966_v12  ;;  %v940_v11 = vand.u32 4294901760, %v939_v10 }
  0x21   : > { %1711 = vmatprep.mubr.f32.mxu1 %v930_v2  ;;  %1797 = vmatprep.subr.bf16.mxu1 %v1966_v12 }
  0x22   : > { %1652 = vmatmul.mubr.f32.gmra.mrb[2].mxu0 %v306_v9  ;;  %1712 = vmatmul.mubr.f32.gmra.mrb[2].mxu1 %v940_v11 }
  0x23   : > { %1658 = vmatprep.mubr.f32.mxu0 %v1978_v19  ;;  %1718 = vmatprep.mubr.f32.mxu1 %v1980_v20 }
  0x26   : > { %1659 = vmatmul.mubr.f32.vlgmr.msra.gmra.mrb[0].mxu0 %v1985_v26  ;;  %1719 = vmatmul.mubr.f32.vlgmr.msra.gmra.mrb[0].mxu1 %v1987_v27 }
  0x27   : > { %1775 = vmatpush3.bf16.msra.mxu0 %v1966_v12  ;;  %1661 = vmatprep.mubr.f32.mxu0 %v2004_v36 }
  0x28   : > { %1777 = vmatprep.subr.bf16.mxu0 %v1943_v4  ;;  %1799 = vmatpush3.bf16.msra.mxu1 %v1966_v12 }
  0x29   : > { %1721 = vmatprep.mubr.f32.mxu1 %v2009_v40  ;;  %1801 = vmatprep.subr.bf16.mxu1 %v1943_v4 }
  0x2a   : > { %1662 = vmatmul.mubr.f32.gmra.mrb[2].mxu0 %v2017_v45  ;;  %1722 = vmatmul.mubr.f32.gmra.mrb[2].mxu1 %v2040_v57 }
  0x2b   : > { %1668 = vmatprep.mubr.f32.mxu0 %v1991_v29  ;;  %1728 = vmatprep.mubr.f32.mxu1 %v1994_v30 }
  0x2e   : > { %1669 = vmatmul.mubr.f32.vlgmr.msra.gmra.mrb[0].mxu0 %v1999_v34  ;;  %1729 = vmatmul.mubr.f32.vlgmr.msra.gmra.mrb[0].mxu1 %v2002_v35 }
  0x2f   : > { %1779 = vmatpush3.bf16.msra.mxu0 %v1943_v4  ;;  %1671 = vmatprep.mubr.f32.mxu0 %v2015_v44 }
  0x30   : > { %1781 = vmatprep.subr.bf16.mxu0 %v1780_v13  ;;  %1803 = vmatpush3.bf16.msra.mxu1 %v1943_v4 }
  0x31   : > { %1731 = vmatprep.mubr.f32.mxu1 %v2026_v48  ;;  %1805 = vmatprep.subr.bf16.mxu1 %v1780_v13 }
  0x32   : > { %1672 = vmatmul.mubr.f32.gmra.mrb[2].mxu0 %v2037_v53  ;;  %1732 = vmatmul.mubr.f32.gmra.mrb[2].mxu1 %v937_v63 }
  0x33   : > { %1678 = vmatprep.mubr.f32.mxu0 %v274_v38  ;;  %1738 = vmatprep.mubr.f32.mxu1 %v908_v39 }
  0x36   : > { %1679 = vmatmul.mubr.f32.vlgmr.msra.gmra.mrb[0].mxu0 %v284_v42  ;;  %1739 = vmatmul.mubr.f32.vlgmr.msra.gmra.mrb[0].mxu1 %v918_v43 }
  0x37   : > { %1783 = vmatpush3.bf16.msra.mxu0 %v1780_v13  ;;  %1681 = vmatprep.mubr.f32.mxu0 %v294_v52 }
  0x38   : > { %1785 = vmatprep.subr.bf16.mxu0 %v1943_v4  ;;  %1807 = vmatpush3.bf16.msra.mxu1 %v1780_v13 }
  0x39   : > { %1741 = vmatprep.mubr.f32.mxu1 %v928_v56  ;;  %1809 = vmatprep.subr.bf16.mxu1 %v1943_v4 }
  0x3a   : > { %1682 = vmatmul.mubr.f32.gmra.mrb[2].mxu0 %v304_v61  ;;  %1742 = vmatmul.mubr.f32.gmra.mrb[2].mxu1 %v938_v3 }
  0x3b   : > { %1688 = vmatprep.mubr.f32.mxu0 %v1978_v19  ;;  %1748 = vmatprep.mubr.f32.mxu1 %v1980_v20 }
  0x3e   : > { %1689 = vmatmul.mubr.f32.vlgmr.msra.gmra.mrb[0].mxu0 %v1985_v26  ;;  %1749 = vmatmul.mubr.f32.vlgmr.msra.gmra.mrb[0].mxu1 %v1987_v27 }
  0x3f   : > { %1787 = vmatpush3.bf16.msra.mxu0 %v1943_v4  ;;  %1691 = vmatprep.mubr.f32.mxu0 %v2004_v36 }
  0x40   : > { %1811 = vmatpush3.bf16.msra.mxu1 %v1943_v4  ;;  %1751 = vmatprep.mubr.f32.mxu1 %v2009_v40 }
  0x42   : > { %1692 = vmatmul.mubr.f32.gmra.mrb[2].mxu0 %v2017_v45  ;;  %1752 = vmatmul.mubr.f32.gmra.mrb[2].mxu1 %v2040_v57 }
  0x43   : > { %1698 = vmatprep.mubr.f32.mxu0 %v1978_v19  ;;  %1758 = vmatprep.mubr.f32.mxu1 %v1980_v20 }
  0x46   : > { %1699 = vmatmul.mubr.f32.vlgmr.msra.gmra.mrb[0].mxu0 %v1985_v26  ;;  %1759 = vmatmul.mubr.f32.vlgmr.msra.gmra.mrb[0].mxu1 %v1987_v27 }
  0x47   : > { %1701 = vmatprep.mubr.f32.mxu0 %v2004_v36  ;;  %1761 = vmatprep.mubr.f32.mxu1 %v2009_v40 }
  0x4a   : > { %1702 = vmatmul.mubr.f32.gmra.mrb[2].mxu0 %v2017_v45  ;;  %1762 = vmatmul.mubr.f32.gmra.mrb[2].mxu1 %v2040_v57 }
 0x119   : > { %v1700_v4 = vpop.f32.mrb[0].mxu0  ;;  %v1760_v6 = vpop.f32.mrb[0].mxu1 }
 0x11a   : > { %795 = vst.msk [vmem:[%s2106_s24 + $0x8] sm:$0xff] %vm793_vm1, %v1700_v4  ;;  %804 = vrot.lane.b32.xlu0 %v1700_v4, %s1901_s25  ;;  %v771_v5 = vpop.f32.mrb[1].mxu0  ;;  %1561 = vst.msk [vmem:[%s2106_s24 + $0x48] sm:$0xff] %vm793_vm1, %v1760_v6  ;;  %1438 = vrot.lane.b32.xlu1 %v1760_v6, %s1901_s25  ;;  %v1405_v7 = vpop.f32.mrb[1].mxu1 }
 0x11b   : > { %794 = vst.msk [vmem:[%s2106_s24] sm:$0xff] %vm793_vm1, %v771_v5  ;;  %1560 = vst.msk [vmem:[%s2106_s24 + $0x40] sm:$0xff] %vm793_vm1, %v1405_v7 }
 0x11d   : > { %v1703_v8 = vpop.f32.mrb[2].mxu0  ;;  %v1763_v14 = vpop.f32.mrb[2].mxu1 }
 0x11e   : > { %797 = vst.msk [vmem:[%s2106_s24 + $0x18] sm:$0xff] %vm793_vm1, %v1703_v8  ;;  %802 = vrot.lane.b32.xlu0 %v771_v5, %s1901_s25  ;;  %v783_v12 = vpop.f32.mrb[3].mxu0  ;;  %1563 = vst.msk [vmem:[%s2106_s24 + $0x58] sm:$0xff] %vm793_vm1, %v1763_v14  ;;  %v1417_v15 = vpop.f32.mrb[3].mxu1  ;;  %808 = vrot.lane.b32.xlu1 %v1703_v8, %s1901_s25 }
 0x11f   : > { %796 = vst.msk [vmem:[%s2106_s24 + $0x10] sm:$0xff] %vm793_vm1, %v783_v12  ;;  %1562 = vst.msk [vmem:[%s2106_s24 + $0x50] sm:$0xff] %vm793_vm1, %v1417_v15 }
 0x122   : > { %1436 = vrot.lane.b32.xlu0 %v1405_v7, %s1901_s25  ;;  %806 = vrot.lane.b32.xlu1 %v783_v12, %s1901_s25 }
 0x126   : > { %1440 = vrot.lane.b32.xlu0 %v1417_v15, %s1901_s25  ;;  %1442 = vrot.lane.b32.xlu1 %v1763_v14, %s1901_s25 }
 0x18c   : > { %v805_v16 = vpop.permute.xlu0 %804  ;;  %v1439_v17 = vpop.permute.xlu1 %1438 }
 0x18d   : > { %1553 = vst.msk [vmem:[%s2106_s24 + $0x28] sm:$0xff] %vm793_vm1, %v805_v16  ;;  %1565 = vst.msk [vmem:[%s2106_s24 + $0x68] sm:$0xff] %vm793_vm1, %v1439_v17 }
 0x190   : > { %v803_v18 = vpop.permute.xlu0 %802  ;;  %v809_v19 = vpop.permute.xlu1 %808 }
 0x191   : > { %1552 = vst.msk [vmem:[%s2106_s24 + $0x20] sm:$0xff] %vm793_vm1, %v803_v18  ;;  %1555 = vst.msk [vmem:[%s2106_s24 + $0x38] sm:$0xff] %vm793_vm1, %v809_v19 }
 0x194   : > { %v1437_v20 = vpop.permute.xlu0 %1436  ;;  %v807_v21 = vpop.permute.xlu1 %806 }
 0x195   : > { %1564 = vst.msk [vmem:[%s2106_s24 + $0x60] sm:$0xff] %vm793_vm1, %v1437_v20  ;;  %1554 = vst.msk [vmem:[%s2106_s24 + $0x30] sm:$0xff] %vm793_vm1, %v807_v21 }
 0x198   : > { %v1441_v22 = vpop.permute.xlu0 %1440  ;;  %v1443_v23 = vpop.permute.xlu1 %1442 }
 0x199   : > { %1566 = vst.msk [vmem:[%s2106_s24 + $0x70] sm:$0xff] %vm793_vm1, %v1441_v22  ;;  %1567 = vst.msk [vmem:[%s2106_s24 + $0x78] sm:$0xff] %vm793_vm1, %v1443_v23 }
 0x19a PF: > { %s12_s11 = sadd.s32 1, %s1899_s11   ;;  %s2152_s9 = smov %s1895_s10 }
 0x19b   : > { %p9_p5 = scmp.ge.s32.totalorder %s12_s11, 4   ;;  %s2153_s10 = smov %s2155_s12 }
 0x19d   :  { %11 = sbr.rel (!%p9_p5) target bundleno = 2 (0x2), region = 68 }

// kernel: tpu_custom_call.1
= control target key start
LH: loop header
LB: loop body
LE: loop exit
PB: predicated region body
PF: predicated region fallthrough
CT: control target
= control target key end

     0   :  { %8 = vsyncpa [#allocation3], 0  ;;  %s5886_s0 = inlined_call_operand.hbm [shape: f32[2,4,16,16], index: 0, kind: input, shape index: {}]   ;;  %s5887_s1 = inlined_call_operand.vmem [shape: f32[2,8,16], index: 1, kind: input, shape index: {}]   ;;  %s5888_s2 = inlined_call_operand.vmem [shape: f32[2,16,8], index: 2, kind: input, shape index: {}]   ;;  %s5889_s3 = inlined_call_operand.hbm [shape: f32[2,4,4,8,8], index: 3, kind: output, shape index: {}]  }
   0x1   :  { %10 = vsyncpa [#allocation3 + $0x1], 0 }
   0x2   :  { %11 = vsyncpa [#allocation4], 0 }
   0x3   :  { %13 = vsyncpa [#allocation4 + $0x1], 0  ;;  %s5378_s12 = smov 0   ;;  %s5380_s13 = smov 0  }
   0x4   :  { %s5382_s14 = smov 0   ;;  %s5384_s15 = smov 0  }
   0x5   :  { %s5386_s16 = smov 0   ;;  %s5388_s17 = smov 0  }
   0x6   :  { %s5390_s18 = smov 0   ;;  %s5392_s19 = smov 0  }
   0x7   :  { %s5394_s20 = smov 0   ;;  %s5396_s21 = smov 0  }
   0x8   :  { %s5398_s22 = smov 0   ;;  %s5400_s23 = smov 0  }
   0x9   :  { %s5402_s24 = smov 0  }
   0xa LB: > { %5895 = sst [smem:[#allocation8_spill]] %s5343_s23  ;;  %s4278_s25 = sadd.s32 4294967295, %s5347_s24   ;;  %s5347_s24 = sphi %s5402_s24, %s19_s24   ;;  %s5343_s23 = sphi %s5400_s23, %s5912_s23   ;;  %s5339_s22 = sphi %s5398_s22, %s5922_s22   ;;  %s5335_s21 = sphi %s5396_s21, %s5921_s21   ;;  %s5331_s20 = sphi %s5394_s20, %s5909_s20   ;;  %s5327_s19 = sphi %s5392_s19, %s5920_s19   ;;  %s5323_s18 = sphi %s5390_s18, %s5919_s18   ;;  %s5319_s17 = sphi %s5388_s17, %s5918_s17   ;;  %s5315_s16 = sphi %s5386_s16, %s5917_s16   ;;  %s5311_s15 = sphi %s5384_s15, %s5916_s15   ;;  %s5307_s14 = sphi %s5382_s14, %s5915_s14   ;;  %s5303_s13 = sphi %s5380_s13, %s5914_s13   ;;  %s5299_s12 = sphi %s5378_s12, %s5913_s12  }
   0xb   : > { %s31_s27 = sadd.s32 1, %s5335_s21  ;;  %s34_s28 = sadd.s32 1, %s5339_s22 }
   0xc   : > { %p32_p0 = scmp.ge.s32.totalorder %s31_s27, 2  ;;  %s38_s29 = sadd.s32 1, %s5343_s23 }
   0xd   : > { %s45_s30 = sadd.s32 1, %s5319_s17  ;;  %p52_p1 = scmp.ne.s32.totalorder %s5319_s17, %s5315_s16 }
   0xe   : > { %s5924_s27 = smov (%p32_p0, %s31_s27), 0  ;;  %s5926_s28 = smov (!%p32_p0, %s34_s28), %s5339_s22 }
   0xf   : > { %5896 = sst [smem:[#allocation9_spill]] %s5924_s27  ;;  %p53_p2 = scmp.eq.s32.totalorder %s5347_s24, 0 }
  0x10   : > { %p58_p3 = scmp.ne.s32.totalorder %s5315_s16, %s5311_s15  ;;  %p36_p4 = scmp.ge.s32.totalorder %s5926_s28, 2 }
  0x11   : > { %p59_p5 = scmp.eq.s32.totalorder %s4278_s25, 0  ;;  %p5454_p6 = por %p53_p2, %p52_p1 }
  0x12   : > { %s4280_s5 = sshll.u32 %s5339_s22, 1  ;;  %s5928_s28 = smov (%p36_p4, %s5926_s28), 0 }
  0x13   : > { %5898 = sst [smem:[#allocation10_spill]] %s5928_s28  ;;  %s5930_s29 = smov (!%p36_p4, %s38_s29), %s5343_s23 }
  0x14   : > { %p5462_p7 = por %p59_p5, %p58_p3  ;;  %s121_s7 = sadd.s32 %s5335_s21, %s4280_s5 }
  0x15   : > { %p40_p8 = scmp.ge.s32.totalorder %s5930_s29, 2  ;;  %s4281_s8 = sshll.u32 %s5928_s28, 1 }
  0x16   : > { %s123_s9 = sadd.s32 %s4281_s8, %s5924_s27  ;;  %s129_s10 = sadd.s32 1, %s5307_s14 }
  0x17   : > { %s5932_s29 = smov (%p40_p8, %s5930_s29), 0  ;;  %s125_s11 = ssub.s32 %s121_s7, %s123_s9 }
  0x18   : > { %5900 = sst [smem:[#allocation11_spill]] %s5932_s29  ;;  %p139_p9 = scmp.ne.s32.totalorder %s5307_s14, %s5303_s13 }
  0x19   : > { %s42_s15 = ssub.s32 %s5343_s23, %s5932_s29  ;;  %p140_p10 = scmp.eq.s32.totalorder %s4278_s25, 7 }
  0x1a   : > { %p43_p11 = scmp.eq.s32.totalorder %s42_s15, 0  ;;  %s126_s26 = sor.u32 %s125_s11, %s42_s15 }
  0x1b   : > { %p127_p12 = scmp.eq.s32.totalorder %s126_s26, 0  ;;  %p5476_p13 = por %p140_p10, %p139_p9 }
  0x1c   : > { %s5481_s8 = scalar_select %p43_p11, %s5319_s17, %s45_s30  }
  0x1d   : > { %s5901_s5 = scalar_select %p5476_p13, 1, 0 }
  0x1e   : > { %s5484_s28 = scalar_select %p127_p12, %s5307_s14, %s129_s10  }
  0x1f   : > { %p145_p0 = scmp.ne.s32.totalorder %s5303_s13, %s5299_s12  ;;  %s5902_s27 = sadd.s32 4294967294, %s5347_s24  }
  0x20   : > { %p146_p1 = scmp.eq.s32.totalorder %s5902_s27, 7  ;;  %p5066_p2 = scmp.lt.s32.totalorder %s5347_s24, 8 }
  0x21   : > { %s166_s25 = sand.u32 1, %s5319_s17   ;;  %s4300_s26 = sshll.u32 %s5343_s23, 10 }
  0x22   : > { %p5491_p3 = por %p146_p1, %p145_p0  ;;  %s4284_s9 = sshll.u32 %s166_s25, 6 }
  0x23   : > { %s5500_s29 = scalar_lea.hbm %s5886_s0, %s4300_s26  ;;  %s170_s30 = scalar_lea.vmem [#allocation2], %s4284_s9 }
  0x24   : > { %s5903_s7 = scalar_select %p5491_p3, 1, 0 }
  0x25   : > { %s177_s10 = sshll.u32 %s170_s30, 4  ;;  %p5506_p4 = pnand %p5066_p2, %p5454_p6  ;;  %s5502_s10 = int_to_ptr.vmem [resolvable:$true] %s177_s10 }
  0x26   : > { %s5511_s23 = scalar_lea.sflag [#allocation3], %s166_s25  ;;  %s5179_s26 = scalar_lea.hbm %s5500_s29, 1024 }
  0x27   : > { %p5180_p8 = scmp.ne.s32.totalorder %s5500_s29, %s5179_s26  ;;  %p5181_p9 = pneg %p5506_p4 }
  0x28   : > { %s5184_s4 = scalar_lea.hbm %s5886_s0, 2048  ;;  %p5185_p6 = scmp.lt.u32.totalorder %s5500_s29, %s5886_s0 }
  0x29   : > { %p5182_p10 = pnand %p5181_p9, %p5180_p8  ;;  %p5186_p12 = scmp.lt.u32.totalorder %s5184_s4, %s5179_s26 }
  0x2a   : > { %p5188_p1 = scmp.lt.u32.totalorder %s5179_s26, %s5500_s29 }
  0x2b   : > { %p5183_p11 = pneg %p5182_p10  ;;  %p5187_p0 = por %p5186_p12, %p5185_p6 }
  0x2d   : > { %p5189_p2 = por %p5188_p1, %p5187_p0 }
  0x2f   : > { %p5190_p5 = pnand %p5189_p2, %p5183_p11 }
  0x31   : > { %5193 = shalt.err (!%p5190_p5)
}
  0x32   : > { %s5194_s25 = scalar_lea.vmem %s5502_s10, 1024  ;;  %s5349_s9 = smov [#allocation2]  }
  0x33   : > { %p5195_p8 = scmp.ne.s32.totalorder %s5502_s10, %s5194_s25  ;;  %s5199_s11 = sshll.u32 %s5349_s9, 4  ;;  %s5200_s11 = int_to_ptr.vmem [resolvable:$false] %s5199_s11 }
  0x34   : > { %s5201_s15 = scalar_lea.vmem %s5200_s11, 2048  ;;  %p5202_p13 = scmp.lt.s32.totalorder %s5502_s10, %s5200_s11 }
  0x35   : > { %p5197_p10 = pnand %p5195_p8, %p5181_p9  ;;  %p5203_p6 = scmp.lt.s32.totalorder %s5201_s15, %s5194_s25 }
  0x37   : > { %p5198_p3 = pneg %p5197_p10  ;;  %p5204_p12 = por %p5203_p6, %p5202_p13 }
  0x39   : > { %p5205_p0 = pnand %p5204_p12, %p5198_p3 }
  0x3b   : > { %5208 = shalt.err (!%p5205_p0)
}
  0x3c   : > { %s5350_s26 = smov 128   ;;  %s5351_s4 = smov 8  }
  0x3d   : > { %5061 = dma.hbm_to_vmem [thread:$0]  (!%p5506_p4), %s5500_s29, 1024, %s5502_s10, %s5511_s23, %s5350_s26, %s5350_s26, %s5351_s4  }
  0x3e   : > { %p200_p5 = scmp.lt.s32.totalorder %s5347_s24, 9  ;;  %p5905_p9 = scmp.ge.s32.totalorder %s5347_s24, 1 }
  0x40   : > { %p201_p11 = pnand %p5905_p9, %p200_p5 }
  0x41   : > { %s206_s30 = sand.u32 (!%p201_p11), 1, %s5315_s16  }
  0x42   : > { %204 = sbr.rel (%p201_p11) target bundleno = 660 (0x294), region = 32  ;;  %s4288_s25 = sshll.u32 (!%p201_p11), %s206_s30, 6 }
  0x43   : > { %s207_s9 = scalar_lea.sflag (!%p201_p11), [#allocation3], %s206_s30  ;;  %s5543_s11 = scalar_lea.vmem (!%p201_p11), [#allocation2], %s4288_s25 }
  0x49   : > { %5290 = dma.done.wait (%p5462_p7), %s207_s9, 1024  }
  0x4a   : > { %5292 = vsyncadd (%p5462_p7), %s207_s9, 4294966272  ;;  %p246_p13 = scmp.lt.s32.totalorder %s5323_s18, 1  ;;  %vm264_vm0 = vcmask 130048   ;;  %v253_v2 = vld [vmem:[%s5543_s11] sm:$0xff]  ;;  %v255_v6 = vld [vmem:[%s5543_s11 + $0x10] sm:$0xff]  ;;  %vm5353_vm1 = vmmov 0  }
  0x4b   : > { %v266_v5 = vsel %vm264_vm0, %v253_v2, 0  ;;  %v254_v7 = vld [vmem:[%s5543_s11 + $0x8] sm:$0xff]  ;;  %v256_v8 = vld [vmem:[%s5543_s11 + $0x18] sm:$0xff]  ;;  %v774_v10 = vsel %vm264_vm0, %v255_v6, 0  ;;  %v257_v44 = vld [vmem:[%s5543_s11 + $0x20] sm:$0xff]  ;;  %p242_p7 = scmp.lt.s32.totalorder %s5327_s19, 1 }
  0x4c   : > { %s247_s23 = scalar_select %p246_p13, %s5323_s18, 1  ;;  %v5559_v9 = vand.u32 4294901760, %v266_v5  ;;  %v269_v11 = vsel %vm264_vm0, %v254_v7, 0  ;;  %v777_v12 = vsel %vm264_vm0, %v256_v8, 0  ;;  %v5566_v14 = vand.u32 4294901760, %v774_v10  ;;  %v259_v45 = vld [vmem:[%s5543_s11 + $0x30] sm:$0xff] }
  0x4d   : > { %v5568_v15 = vand.u32 4294901760, %v269_v11  ;;  %v5570_v16 = vand.u32 4294901760, %v777_v12  ;;  %v258_v46 = vld [vmem:[%s5543_s11 + $0x28] sm:$0xff]  ;;  %v1282_v47 = vsel %vm264_vm0, %v257_v44, 0  ;;  %v260_v48 = vld [vmem:[%s5543_s11 + $0x38] sm:$0xff]  ;;  %v1790_v49 = vsel %vm264_vm0, %v259_v45, 0 }
  0x4e   : > { %s4301_s29 = sshll.u32 %s247_s23, 4  ;;  %v339_v17 = vsub.f32 %v266_v5, %v5559_v9  ;;  %v847_v20 = vsub.f32 %v774_v10, %v5566_v14  ;;  %v1285_v50 = vsel %vm264_vm0, %v258_v46, 0  ;;  %v5621_v51 = vand.u32 4294901760, %v1282_v47  ;;  %s239_s9 = sand.u32 1, %s5303_s13  }
  0x4f   : > { %s250_s15 = scalar_lea.vmem %s5888_s2, %s4301_s29  ;;  %v5577_v21 = vsub.f32 %v269_v11, %v5568_v15  ;;  %v5580_v22 = vsub.f32 %v777_v12, %v5570_v16  ;;  %v1793_v52 = vsel %vm264_vm0, %v260_v48, 0  ;;  %v5624_v53 = vand.u32 4294901760, %v1790_v49  ;;  %s4289_s11 = sshll.u32 %s239_s9, 5 }
  0x50   : > { %v262_v0 = vld [vmem:[%s250_s15] sm:$0xff]  ;;  %v263_v1 = vld [vmem:[%s250_s15 + $0x8] sm:$0xff]  ;;  %v340_v23 = vand.u32 4294901760, %v339_v17  ;;  %v848_v26 = vand.u32 4294901760, %v847_v20  ;;  %v5626_v54 = vand.u32 4294901760, %v1285_v50  ;;  %v5629_v55 = vand.u32 4294901760, %v1793_v52 }
  0x51   : > { %v272_v3 = vand.u32 4294901760, %v262_v0  ;;  %v275_v4 = vand.u32 4294901760, %v263_v1  ;;  %v350_v27 = vand.u32 4294901760, %v5577_v21  ;;  %v858_v28 = vand.u32 4294901760, %v5580_v22  ;;  %s243_s6 = scalar_select %p242_p7, %s5327_s19, 1 }
  0x52   : > { %v341_v29 = vsub.f32 %v339_v17, %v340_v23  ;;  %v849_v32 = vsub.f32 %v847_v20, %v848_v26  ;;  %v1355_v56 = vsub.f32 %v1282_v47, %v5621_v51  ;;  %v1863_v57 = vsub.f32 %v1790_v49, %v5624_v53  ;;  %s241_s23 = scalar_lea.vmem [#allocation5], %s4289_s11  ;;  %s4294_s29 = sshll.u32 %s5327_s19, 1 }
  0x53   : > { %v5564_v13 = vpack.c.bf16 %v275_v4, %v272_v3  ;;  %v360_v18 = vsub.f32 %v262_v0, %v272_v3  ;;  %v367_v19 = vsub.f32 %v263_v1, %v275_v4  ;;  %v351_v33 = vsub.f32 %v5577_v21, %v350_v27  ;;  %s4290_s26 = sshll.u32 %s243_s6, 3  ;;  %s4150_s10 = sadd.s32 %s5323_s18, %s4294_s29 }
  0x54   : > { %v859_v34 = vsub.f32 %v5580_v22, %v858_v28  ;;  %v342_v35 = vand.u32 4294901760, %v341_v29  ;;  %v850_v38 = vand.u32 4294901760, %v849_v32  ;;  %v1365_v58 = vsub.f32 %v1285_v50, %v5626_v54  ;;  %s245_s25 = scalar_lea.vmem %s5887_s1, %s4290_s26  ;;  %s4295_s27 = sshll.u32 %s4150_s10, 2 }
  0x55   : > { %4807 = vmatprep.subr.bf16.mxu0 %v5564_v13  ;;  %4831 = vmatprep.subr.bf16.mxu1 %v5564_v13  ;;  %v361_v24 = vand.u32 4294901760, %v360_v18  ;;  %v368_v25 = vand.u32 4294901760, %v367_v19  ;;  %v352_v39 = vand.u32 4294901760, %v351_v33  ;;  %v5590_v42 = vpack.c.bf16 %v367_v19, %v360_v18  ;;  %v261_v10 = vld [vmem:[%s245_s25] sm:$0xff]  ;;  %s4296_s15 = sshll.u32 %s5331_s20, 4  ;;  %s4159_s26 = sshll.u32 %s241_s23, 4  ;;  %s5804_s26 = int_to_ptr.vmem [resolvable:$true] %s4159_s26 }
  0x56   : > { %4809 = vmatpush3.bf16.msra.mxu0 %v5564_v13  ;;  %4833 = vmatpush3.bf16.msra.mxu1 %v5564_v13  ;;  %v860_v40 = vand.u32 4294901760, %v859_v34  ;;  %v1873_v59 = vsub.f32 %v1793_v52, %v5629_v55  ;;  %v1356_v60 = vand.u32 4294901760, %v1355_v56  ;;  %v1864_v61 = vand.u32 4294901760, %v1863_v57  ;;  %s4156_s6 = sadd.s32 %s4296_s15, %s4295_s27  ;;  %s5813_s18 = scalar_lea.sflag [#allocation4], %s239_s9 }
  0x57   : > { %v362_v30 = vsub.f32 %v360_v18, %v361_v24  ;;  %v369_v31 = vsub.f32 %v367_v19, %v368_v25  ;;  %4474 = vmatprep.mubr.f32.mxu0 %v342_v35  ;;  %4516 = vmatprep.mubr.f32.mxu1 %v850_v38  ;;  %v5606_v43 = vpack.c.bf16 %v368_v25, %v361_v24  ;;  %v1366_v62 = vand.u32 4294901760, %v1365_v58  ;;  %s4297_s4 = sshll.u32 %s4156_s6, 7  ;;  %s5209_s19 = scalar_lea.vmem %s5804_s26, 512 }
  0x58   : > { %v1874_v63 = vand.u32 4294901760, %v1873_v59  ;;  %v1357_v0 = vsub.f32 %v1355_v56, %v1356_v60  ;;  %v1865_v1 = vsub.f32 %v1863_v57, %v1864_v61  ;;  %v5352_v8 = vmov 0.0|0.0   ;;  %s5809_s11 = scalar_lea.hbm %s5889_s3, %s4297_s4  ;;  %p5210_p3 = scmp.ne.s32.totalorder %s5804_s26, %s5209_s19 }
  0x59   : > { %v363_v36 = vand.u32 4294901760, %v362_v30  ;;  %v370_v37 = vand.u32 4294901760, %v369_v31  ;;  %4475 = vmatmul.mubr.f32.vlgmr.msra.gmra.mrb[0].mxu0 %v352_v39  ;;  %4517 = vmatmul.mubr.f32.vlgmr.msra.gmra.mrb[0].mxu1 %v860_v40  ;;  %v1367_v2 = vsub.f32 %v1365_v58, %v1366_v62  ;;  %v2298_v11 = vsel %vm264_vm0, %v261_v10, 0  ;;  %p5906_p4 = scmp.ne.s32.totalorder %s5901_s5, 0  ;;  %s5355_s20 = smov [#allocation5]  }
  0x5a   : > { %4481 = vmatprep.mubr.f32.mxu0 %v5559_v9  ;;  %4523 = vmatprep.mubr.f32.mxu1 %v5566_v14  ;;  %v1875_v3 = vsub.f32 %v1873_v59, %v1874_v63  ;;  %v1358_v4 = vand.u32 4294901760, %v1357_v0  ;;  %v1866_v5 = vand.u32 4294901760, %v1865_v1  ;;  %v5696_v12 = vand.u32 4294901760, %v2298_v11  ;;  %s5213_s29 = sshll.u32 %s5355_s20, 4  ;;  %s5214_s29 = int_to_ptr.vmem [resolvable:$false] %s5213_s29 }
  0x5b   : > { %v5588_v41 = vpack.c.bf16 %v370_v37, %v363_v36  ;;  %v1368_v6 = vand.u32 4294901760, %v1367_v2  ;;  %vm4136_vm2 = vcmask 64512   ;;  %p5211_p1 = pnand %p5210_p3, %p5906_p4  ;;  %s5215_s10 = scalar_lea.vmem %s5214_s29, 1024 }
  0x5c   : > { %v1876_v7 = vand.u32 4294901760, %v1875_v3  ;;  %p5216_p8 = scmp.lt.s32.totalorder %s5804_s26, %s5214_s29  ;;  %p5217_p10 = scmp.lt.s32.totalorder %s5215_s10, %s5209_s19 }
  0x5d   : > { %4811 = vmatprep.subr.bf16.mxu0 %v5588_v41  ;;  %4835 = vmatprep.subr.bf16.mxu1 %v5588_v41  ;;  %p5212_p2 = pneg %p5211_p1 }
  0x5e   : > { %4813 = vmatpush3.bf16.msra.mxu0 %v5588_v41  ;;  %4837 = vmatpush3.bf16.msra.mxu1 %v5588_v41  ;;  %p5218_p6 = por %p5217_p10, %p5216_p8 }
  0x5f   : > { %4815 = vmatprep.subr.bf16.mxu0 %v5590_v42  ;;  %4839 = vmatprep.subr.bf16.mxu1 %v5590_v42 }
  0x60   : > { %p5219_p12 = pnand %p5218_p6, %p5212_p2 }
  0x61   : > { %4482 = vmatmul.mubr.f32.vlgmr.msra.gmra.mrb[0].mxu0 %v5568_v15  ;;  %4524 = vmatmul.mubr.f32.vlgmr.msra.gmra.mrb[0].mxu1 %v5570_v16 }
  0x62   : > { %4817 = vmatpush3.bf16.msra.mxu0 %v5590_v42  ;;  %4841 = vmatpush3.bf16.msra.mxu1 %v5590_v42 }
  0x63   : > { %4488 = vmatprep.mubr.f32.mxu0 %v339_v17  ;;  %4530 = vmatprep.mubr.f32.mxu1 %v847_v20 }
  0x64   : > { %4819 = vmatprep.subr.bf16.mxu0 %v5564_v13  ;;  %4843 = vmatprep.subr.bf16.mxu1 %v5564_v13 }
  0x69   : > { %4489 = vmatmul.mubr.f32.vlgmr.msra.gmra.mrb[0].mxu0 %v5577_v21  ;;  %4531 = vmatmul.mubr.f32.vlgmr.msra.gmra.mrb[0].mxu1 %v5580_v22 }
  0x6a   : > { %4821 = vmatpush3.bf16.msra.mxu0 %v5564_v13  ;;  %4845 = vmatpush3.bf16.msra.mxu1 %v5564_v13 }
  0x6b   : > { %4495 = vmatprep.mubr.f32.mxu0 %v340_v23  ;;  %4537 = vmatprep.mubr.f32.mxu1 %v848_v26 }
  0x6c   : > { %4823 = vmatprep.subr.bf16.mxu0 %v5606_v43  ;;  %4847 = vmatprep.subr.bf16.mxu1 %v5606_v43 }
  0x71   : > { %4496 = vmatmul.mubr.f32.vlgmr.msra.gmra.mrb[0].mxu0 %v350_v27  ;;  %4538 = vmatmul.mubr.f32.vlgmr.msra.gmra.mrb[0].mxu1 %v858_v28 }
  0x72   : > { %4825 = vmatpush3.bf16.msra.mxu0 %v5606_v43  ;;  %4849 = vmatpush3.bf16.msra.mxu1 %v5606_v43 }
  0x73   : > { %4502 = vmatprep.mubr.f32.mxu0 %v5559_v9  ;;  %4544 = vmatprep.mubr.f32.mxu1 %v5566_v14 }
  0x74   : > { %4827 = vmatprep.subr.bf16.mxu0 %v5564_v13  ;;  %4851 = vmatprep.subr.bf16.mxu1 %v5564_v13 }
  0x79   : > { %4503 = vmatmul.mubr.f32.vlgmr.msra.gmra.mrb[0].mxu0 %v5568_v15  ;;  %4545 = vmatmul.mubr.f32.vlgmr.msra.gmra.mrb[0].mxu1 %v5570_v16 }
  0x7a   : > { %4829 = vmatpush3.bf16.msra.mxu0 %v5564_v13  ;;  %4853 = vmatpush3.bf16.msra.mxu1 %v5564_v13 }
  0x7b   : > { %4509 = vmatprep.mubr.f32.mxu0 %v5559_v9  ;;  %4551 = vmatprep.mubr.f32.mxu1 %v5566_v14  ;;  %v5354_v9 = vmov 0.0  }
  0x7c   : > { %4855 = vmatprep.subr.bf16.mxu0 %v5564_v13  ;;  %4879 = vmatprep.subr.bf16.mxu1 %v5564_v13 }
  0x81   : > { %4510 = vmatmul.mubr.f32.vlgmr.msra.gmra.mrb[0].mxu0 %v5568_v15  ;;  %4552 = vmatmul.mubr.f32.vlgmr.msra.gmra.mrb[0].mxu1 %v5570_v16 }
  0x82   : > { %4857 = vmatpush3.bf16.msra.mxu0 %v5564_v13  ;;  %4881 = vmatpush3.bf16.msra.mxu1 %v5564_v13 }
  0x83   : > { %4558 = vmatprep.mubr.f32.mxu0 %v1358_v4  ;;  %4600 = vmatprep.mubr.f32.mxu1 %v1866_v5 }
  0x84   : > { %4859 = vmatprep.subr.bf16.mxu0 %v5588_v41  ;;  %4883 = vmatprep.subr.bf16.mxu1 %v5588_v41 }
  0x85   : > { %4559 = vmatmul.mubr.f32.vlgmr.msra.gmra.mrb[2].mxu0 %v1368_v6  ;;  %4601 = vmatmul.mubr.f32.vlgmr.msra.gmra.mrb[2].mxu1 %v1876_v7 }
  0x86   : > { %4861 = vmatpush3.bf16.msra.mxu0 %v5588_v41  ;;  %4885 = vmatpush3.bf16.msra.mxu1 %v5588_v41 }
  0x87   : > { %4565 = vmatprep.mubr.f32.mxu0 %v5621_v51  ;;  %4607 = vmatprep.mubr.f32.mxu1 %v5624_v53 }
  0x88   : > { %4863 = vmatprep.subr.bf16.mxu0 %v5590_v42  ;;  %4887 = vmatprep.subr.bf16.mxu1 %v5590_v42 }
  0x8d   : > { %4566 = vmatmul.mubr.f32.vlgmr.msra.gmra.mrb[2].mxu0 %v5626_v54  ;;  %4608 = vmatmul.mubr.f32.vlgmr.msra.gmra.mrb[2].mxu1 %v5629_v55 }
  0x8e   : > { %4865 = vmatpush3.bf16.msra.mxu0 %v5590_v42  ;;  %4889 = vmatpush3.bf16.msra.mxu1 %v5590_v42 }
  0x8f   : > { %4572 = vmatprep.mubr.f32.mxu0 %v1355_v56  ;;  %4614 = vmatprep.mubr.f32.mxu1 %v1863_v57 }
  0x90   : > { %4867 = vmatprep.subr.bf16.mxu0 %v5564_v13  ;;  %4891 = vmatprep.subr.bf16.mxu1 %v5564_v13 }
  0x95   : > { %4573 = vmatmul.mubr.f32.vlgmr.msra.gmra.mrb[2].mxu0 %v1365_v58  ;;  %4615 = vmatmul.mubr.f32.vlgmr.msra.gmra.mrb[2].mxu1 %v1873_v59 }
  0x96   : > { %4869 = vmatpush3.bf16.msra.mxu0 %v5564_v13  ;;  %4893 = vmatpush3.bf16.msra.mxu1 %v5564_v13 }
  0x97   : > { %4579 = vmatprep.mubr.f32.mxu0 %v1356_v60  ;;  %4621 = vmatprep.mubr.f32.mxu1 %v1864_v61 }
  0x98   : > { %4871 = vmatprep.subr.bf16.mxu0 %v5606_v43  ;;  %4895 = vmatprep.subr.bf16.mxu1 %v5606_v43 }
  0x9d   : > { %4580 = vmatmul.mubr.f32.vlgmr.msra.gmra.mrb[2].mxu0 %v1366_v62  ;;  %4622 = vmatmul.mubr.f32.vlgmr.msra.gmra.mrb[2].mxu1 %v1874_v63 }
  0x9e   : > { %4873 = vmatpush3.bf16.msra.mxu0 %v5606_v43  ;;  %4897 = vmatpush3.bf16.msra.mxu1 %v5606_v43 }
  0x9f   : > { %4586 = vmatprep.mubr.f32.mxu0 %v5621_v51  ;;  %4628 = vmatprep.mubr.f32.mxu1 %v5624_v53 }
  0xa0   : > { %4875 = vmatprep.subr.bf16.mxu0 %v5564_v13  ;;  %4899 = vmatprep.subr.bf16.mxu1 %v5564_v13 }
  0xa5   : > { %4587 = vmatmul.mubr.f32.vlgmr.msra.gmra.mrb[2].mxu0 %v5626_v54  ;;  %4629 = vmatmul.mubr.f32.vlgmr.msra.gmra.mrb[2].mxu1 %v5629_v55 }
  0xa6   : > { %4877 = vmatpush3.bf16.msra.mxu0 %v5564_v13  ;;  %4901 = vmatpush3.bf16.msra.mxu1 %v5564_v13  ;;  %v5699_v13 = vsub.f32 %v2298_v11, %v5696_v12 }
  0xa7   : > { %4593 = vmatprep.mubr.f32.mxu0 %v5621_v51  ;;  %4635 = vmatprep.mubr.f32.mxu1 %v5624_v53 }
  0xa8   : > { %4902 = vmatprep.subr.bf16.mxu0 %v5352_v8  ;;  %4920 = vmatprep.subr.bf16.mxu1 %v5352_v8  ;;  %v5702_v14 = vand.u32 4294901760, %v5699_v13 }
  0xaa   : > { %v2370_v19 = vsub.f32 %v5699_v13, %v5702_v14 }
  0xac   : > { %v5706_v31 = vand.u32 4294901760, %v2370_v19 }
  0xad   : > { %4594 = vmatmul.mubr.f32.vlgmr.msra.gmra.mrb[2].mxu0 %v5626_v54  ;;  %4636 = vmatmul.mubr.f32.vlgmr.msra.gmra.mrb[2].mxu1 %v5629_v55 }
  0xae   : > { %4642 = vmatprep.mubr.msk.f32.mxu0 %vm5353_vm1, %v5354_v9  ;;  %4684 = vmatprep.mubr.msk.f32.mxu1 %vm5353_vm1, %v5354_v9 }
 0x154   : > { %v4511_v15 = vpop.f32.mrb[0].mxu0  ;;  %v4553_v17 = vpop.f32.mrb[0].mxu1 }
 0x155   : > { %v2304_v16 = vand.u32 4294901760, %v4511_v15  ;;  %v763_v18 = vpop.f32.mrb[1].mxu0  ;;  %v2763_v20 = vand.u32 4294901760, %v4553_v17  ;;  %v1271_v22 = vpop.f32.mrb[1].mxu1 }
 0x156   : > { %v2301_v21 = vand.u32 4294901760, %v763_v18  ;;  %v2760_v24 = vand.u32 4294901760, %v1271_v22 }
 0x157   : > { %v2386_v23 = vsub.f32 %v4511_v15, %v2304_v16  ;;  %v2845_v25 = vsub.f32 %v4553_v17, %v2763_v20 }
 0x158   : > { %v4903_v26 = vpack.c.bf16 %v2304_v16, %v2301_v21  ;;  %v2379_v27 = vsub.f32 %v763_v18, %v2301_v21  ;;  %v4921_v29 = vpack.c.bf16 %v2763_v20, %v2760_v24  ;;  %v2838_v30 = vsub.f32 %v1271_v22, %v2760_v24 }
 0x159   : > { %v2387_v28 = vand.u32 4294901760, %v2386_v23  ;;  %v2846_v32 = vand.u32 4294901760, %v2845_v25 }
 0x15a   : > { %v2380_v33 = vand.u32 4294901760, %v2379_v27  ;;  %v4909_v34 = vpack.c.bf16 %v2386_v23, %v2379_v27  ;;  %4904 = vmatpush3.bf16.msra.mxu0 %v4903_v26  ;;  %v2839_v36 = vand.u32 4294901760, %v2838_v30  ;;  %v4927_v37 = vpack.c.bf16 %v2845_v25, %v2838_v30  ;;  %4922 = vmatpush3.bf16.msra.mxu1 %v4921_v29 }
 0x15b   : > { %v2388_v35 = vsub.f32 %v2386_v23, %v2387_v28  ;;  %4905 = vmatprep.subr.bf16.mxu0 %v5352_v8  ;;  %v2847_v38 = vsub.f32 %v2845_v25, %v2846_v32  ;;  %4923 = vmatprep.subr.bf16.mxu1 %v5352_v8 }
 0x15c   : > { %v2381_v39 = vsub.f32 %v2379_v27, %v2380_v33  ;;  %v4915_v40 = vpack.c.bf16 %v2387_v28, %v2380_v33  ;;  %v2840_v42 = vsub.f32 %v2838_v30, %v2839_v36  ;;  %v4933_v43 = vpack.c.bf16 %v2846_v32, %v2839_v36 }
 0x15d   : > { %v2389_v41 = vand.u32 4294901760, %v2388_v35  ;;  %4643 = vmatmul.mubr.f32.vlgmr.msra.gmra.mrb[4].mxu0 %v5706_v31  ;;  %v2848_v44 = vand.u32 4294901760, %v2847_v38  ;;  %4685 = vmatmul.mubr.f32.vlgmr.msra.gmra.mrb[4].mxu1 %v5706_v31 }
 0x15e   : > { %v2382_v45 = vand.u32 4294901760, %v2381_v39  ;;  %4649 = vmatprep.mubr.msk.f32.mxu0 %vm5353_vm1, %v5354_v9  ;;  %v2841_v46 = vand.u32 4294901760, %v2840_v42  ;;  %4691 = vmatprep.mubr.msk.f32.mxu1 %vm5353_vm1, %v5354_v9 }
 0x160   : > { %v4906_v47 = vpack.c.bf16 %v2389_v41, %v2382_v45  ;;  %v4924_v48 = vpack.c.bf16 %v2848_v44, %v2841_v46 }
 0x162   : > { %4907 = vmatpush3.bf16.msra.mxu0 %v4906_v47  ;;  %4925 = vmatpush3.bf16.msra.mxu1 %v4924_v48 }
 0x163   : > { %4908 = vmatprep.subr.bf16.mxu0 %v5352_v8  ;;  %4926 = vmatprep.subr.bf16.mxu1 %v5352_v8 }
 0x165   : > { %4650 = vmatmul.mubr.f32.vlgmr.msra.gmra.mrb[4].mxu0 %v5696_v12  ;;  %4692 = vmatmul.mubr.f32.vlgmr.msra.gmra.mrb[4].mxu1 %v5696_v12 }
 0x166   : > { %4910 = vmatpush3.bf16.msra.mxu0 %v4909_v34  ;;  %4928 = vmatpush3.bf16.msra.mxu1 %v4927_v37 }
 0x167   : > { %4656 = vmatprep.mubr.msk.f32.mxu0 %vm5353_vm1, %v5354_v9  ;;  %4911 = vmatprep.subr.bf16.mxu0 %v5352_v8 }
 0x168   : > { %4698 = vmatprep.mubr.msk.f32.mxu1 %vm5353_vm1, %v5354_v9  ;;  %4929 = vmatprep.subr.bf16.mxu1 %v5352_v8 }
 0x16d   : > { %4657 = vmatmul.mubr.f32.vlgmr.msra.gmra.mrb[4].mxu0 %v5699_v13  ;;  %4699 = vmatmul.mubr.f32.vlgmr.msra.gmra.mrb[4].mxu1 %v5699_v13 }
 0x16e   : > { %4913 = vmatpush3.bf16.msra.mxu0 %v4903_v26  ;;  %4931 = vmatpush3.bf16.msra.mxu1 %v4921_v29 }
 0x16f   : > { %4663 = vmatprep.mubr.msk.f32.mxu0 %vm5353_vm1, %v5354_v9  ;;  %4914 = vmatprep.subr.bf16.mxu0 %v5352_v8 }
 0x170   : > { %4705 = vmatprep.mubr.msk.f32.mxu1 %vm5353_vm1, %v5354_v9  ;;  %4932 = vmatprep.subr.bf16.mxu1 %v5352_v8 }
 0x175   : > { %4664 = vmatmul.mubr.f32.vlgmr.msra.gmra.mrb[4].mxu0 %v5702_v14  ;;  %4706 = vmatmul.mubr.f32.vlgmr.msra.gmra.mrb[4].mxu1 %v5702_v14 }
 0x176   : > { %4916 = vmatpush3.bf16.msra.mxu0 %v4915_v40  ;;  %4934 = vmatpush3.bf16.msra.mxu1 %v4933_v43 }
 0x177   : > { %4670 = vmatprep.mubr.msk.f32.mxu0 %vm5353_vm1, %v5354_v9  ;;  %4917 = vmatprep.subr.bf16.mxu0 %v5352_v8 }
 0x178   : > { %4712 = vmatprep.mubr.msk.f32.mxu1 %vm5353_vm1, %v5354_v9  ;;  %4935 = vmatprep.subr.bf16.mxu1 %v5352_v8 }
 0x17d   : > { %4671 = vmatmul.mubr.f32.vlgmr.msra.gmra.mrb[4].mxu0 %v5696_v12  ;;  %4713 = vmatmul.mubr.f32.vlgmr.msra.gmra.mrb[4].mxu1 %v5696_v12 }
 0x17e   : > { %4919 = vmatpush3.bf16.msra.mxu0 %v4903_v26  ;;  %4937 = vmatpush3.bf16.msra.mxu1 %v4921_v29 }
 0x17f   : > { %4677 = vmatprep.mubr.msk.f32.mxu0 %vm5353_vm1, %v5354_v9  ;;  %4719 = vmatprep.mubr.msk.f32.mxu1 %vm5353_vm1, %v5354_v9 }
 0x180   : > { %v4595_v49 = vpop.f32.mrb[2].mxu0  ;;  %4938 = vmatprep.subr.bf16.mxu0 %v5352_v8  ;;  %v4637_v51 = vpop.f32.mrb[2].mxu1  ;;  %4956 = vmatprep.subr.bf16.mxu1 %v5352_v8 }
 0x181   : > { %v3222_v50 = vand.u32 4294901760, %v4595_v49  ;;  %v1779_v52 = vpop.f32.mrb[3].mxu0  ;;  %v3681_v53 = vand.u32 4294901760, %v4637_v51  ;;  %v2287_v55 = vpop.f32.mrb[3].mxu1 }
 0x182   : > { %v3219_v54 = vand.u32 4294901760, %v1779_v52  ;;  %v3678_v57 = vand.u32 4294901760, %v2287_v55 }
 0x183   : > { %v3304_v56 = vsub.f32 %v4595_v49, %v3222_v50  ;;  %v3763_v58 = vsub.f32 %v4637_v51, %v3681_v53 }
 0x184   : > { %v4939_v59 = vpack.c.bf16 %v3222_v50, %v3219_v54  ;;  %v3297_v60 = vsub.f32 %v1779_v52, %v3219_v54  ;;  %v4957_v62 = vpack.c.bf16 %v3681_v53, %v3678_v57  ;;  %v3756_v63 = vsub.f32 %v2287_v55, %v3678_v57 }
 0x185   : > { %v3305_v61 = vand.u32 4294901760, %v3304_v56  ;;  %4678 = vmatmul.mubr.f32.vlgmr.msra.gmra.mrb[4].mxu0 %v5696_v12  ;;  %v3764_v0 = vand.u32 4294901760, %v3763_v58  ;;  %4720 = vmatmul.mubr.f32.vlgmr.msra.gmra.mrb[4].mxu1 %v5696_v12 }
 0x186   : > { %v3298_v1 = vand.u32 4294901760, %v3297_v60  ;;  %v4945_v2 = vpack.c.bf16 %v3304_v56, %v3297_v60  ;;  %4940 = vmatpush3.bf16.msra.mxu0 %v4939_v59  ;;  %v3757_v4 = vand.u32 4294901760, %v3756_v63  ;;  %v4963_v5 = vpack.c.bf16 %v3763_v58, %v3756_v63  ;;  %4958 = vmatpush3.bf16.msra.mxu1 %v4957_v62 }
 0x187   : > { %v3306_v3 = vsub.f32 %v3304_v56, %v3305_v61  ;;  %4726 = vmatprep.mubr.msk.f32.mxu0 %vm5353_vm1, %v5354_v9  ;;  %v3765_v6 = vsub.f32 %v3763_v58, %v3764_v0  ;;  %4768 = vmatprep.mubr.msk.f32.mxu1 %vm5353_vm1, %v5354_v9 }
 0x188   : > { %v3299_v7 = vsub.f32 %v3297_v60, %v3298_v1  ;;  %4941 = vmatprep.subr.bf16.mxu0 %v5352_v8  ;;  %v4951_v10 = vpack.c.bf16 %v3305_v61, %v3298_v1  ;;  %v3758_v15 = vsub.f32 %v3756_v63, %v3757_v4  ;;  %4959 = vmatprep.subr.bf16.mxu1 %v5352_v8 }
 0x189   : > { %v3307_v11 = vand.u32 4294901760, %v3306_v3  ;;  %4727 = vmatmul.mubr.f32.vlgmr.msra.gmra.mrb[6].mxu0 %v5706_v31  ;;  %v4969_v16 = vpack.c.bf16 %v3764_v0, %v3757_v4  ;;  %v3766_v17 = vand.u32 4294901760, %v3765_v6  ;;  %4769 = vmatmul.mubr.f32.vlgmr.msra.gmra.mrb[6].mxu1 %v5706_v31 }
 0x18a   : > { %v3300_v18 = vand.u32 4294901760, %v3299_v7  ;;  %4733 = vmatprep.mubr.msk.f32.mxu0 %vm5353_vm1, %v5354_v9  ;;  %v3759_v19 = vand.u32 4294901760, %v3758_v15  ;;  %4775 = vmatprep.mubr.msk.f32.mxu1 %vm5353_vm1, %v5354_v9 }
 0x18c   : > { %v4942_v20 = vpack.c.bf16 %v3307_v11, %v3300_v18  ;;  %v4960_v21 = vpack.c.bf16 %v3766_v17, %v3759_v19 }
 0x18e   : > { %4943 = vmatpush3.bf16.msra.mxu0 %v4942_v20  ;;  %4961 = vmatpush3.bf16.msra.mxu1 %v4960_v21 }
 0x18f   : > { %4944 = vmatprep.subr.bf16.mxu0 %v5352_v8  ;;  %4962 = vmatprep.subr.bf16.mxu1 %v5352_v8 }
 0x191   : > { %4734 = vmatmul.mubr.f32.vlgmr.msra.gmra.mrb[6].mxu0 %v5696_v12  ;;  %4776 = vmatmul.mubr.f32.vlgmr.msra.gmra.mrb[6].mxu1 %v5696_v12 }
 0x192   : > { %4946 = vmatpush3.bf16.msra.mxu0 %v4945_v2  ;;  %4964 = vmatpush3.bf16.msra.mxu1 %v4963_v5 }
 0x193   : > { %4740 = vmatprep.mubr.msk.f32.mxu0 %vm5353_vm1, %v5354_v9  ;;  %4947 = vmatprep.subr.bf16.mxu0 %v5352_v8 }
 0x194   : > { %4782 = vmatprep.mubr.msk.f32.mxu1 %vm5353_vm1, %v5354_v9  ;;  %4965 = vmatprep.subr.bf16.mxu1 %v5352_v8 }
 0x199   : > { %4741 = vmatmul.mubr.f32.vlgmr.msra.gmra.mrb[6].mxu0 %v5699_v13  ;;  %4783 = vmatmul.mubr.f32.vlgmr.msra.gmra.mrb[6].mxu1 %v5699_v13 }
 0x19a   : > { %4949 = vmatpush3.bf16.msra.mxu0 %v4939_v59  ;;  %4967 = vmatpush3.bf16.msra.mxu1 %v4957_v62 }
 0x19b   : > { %4747 = vmatprep.mubr.msk.f32.mxu0 %vm5353_vm1, %v5354_v9  ;;  %4950 = vmatprep.subr.bf16.mxu0 %v5352_v8 }
 0x19c   : > { %4789 = vmatprep.mubr.msk.f32.mxu1 %vm5353_vm1, %v5354_v9  ;;  %4968 = vmatprep.subr.bf16.mxu1 %v5352_v8 }
 0x1a1   : > { %4748 = vmatmul.mubr.f32.vlgmr.msra.gmra.mrb[6].mxu0 %v5702_v14  ;;  %4790 = vmatmul.mubr.f32.vlgmr.msra.gmra.mrb[6].mxu1 %v5702_v14 }
 0x1a2   : > { %4952 = vmatpush3.bf16.msra.mxu0 %v4951_v10  ;;  %4970 = vmatpush3.bf16.msra.mxu1 %v4969_v16 }
 0x1a3   : > { %4754 = vmatprep.mubr.msk.f32.mxu0 %vm5353_vm1, %v5354_v9  ;;  %4953 = vmatprep.subr.bf16.mxu0 %v5352_v8 }
 0x1a4   : > { %4796 = vmatprep.mubr.msk.f32.mxu1 %vm5353_vm1, %v5354_v9  ;;  %4971 = vmatprep.subr.bf16.mxu1 %v5352_v8 }
 0x1a9   : > { %4755 = vmatmul.mubr.f32.vlgmr.msra.gmra.mrb[6].mxu0 %v5696_v12  ;;  %4797 = vmatmul.mubr.f32.vlgmr.msra.gmra.mrb[6].mxu1 %v5696_v12 }
 0x1aa   : > { %4955 = vmatpush3.bf16.msra.mxu0 %v4939_v59  ;;  %4973 = vmatpush3.bf16.msra.mxu1 %v4957_v62 }
 0x1ab   : > { %4761 = vmatprep.mubr.msk.f32.mxu0 %vm5353_vm1, %v5354_v9  ;;  %4803 = vmatprep.mubr.msk.f32.mxu1 %vm5353_vm1, %v5354_v9 }
 0x1b1   : > { %4762 = vmatmul.mubr.f32.vlgmr.msra.gmra.mrb[6].mxu0 %v5696_v12  ;;  %4804 = vmatmul.mubr.f32.vlgmr.msra.gmra.mrb[6].mxu1 %v5696_v12 }
 0x258   : > { %v2755_v8 = vpop.f32.mrb[4].mxu0  ;;  %v3214_v13 = vpop.f32.mrb[4].mxu1 }
 0x259   : > { %4137 = vst.msk [vmem:[%s241_s23] sm:$0xff] %vm4136_vm2, %v2755_v8  ;;  %v4679_v14 = vpop.f32.mrb[5].mxu0  ;;  %4138 = vst.msk [vmem:[%s241_s23 + $0x8] sm:$0xff] %vm4136_vm2, %v3214_v13  ;;  %v4721_v22 = vpop.f32.mrb[5].mxu1 }
 0x284   : > { %v3673_v9 = vpop.f32.mrb[6].mxu0  ;;  %v4132_v12 = vpop.f32.mrb[6].mxu1 }
 0x285   : > { %4139 = vst.msk [vmem:[%s241_s23 + $0x10] sm:$0xff] %vm4136_vm2, %v3673_v9  ;;  %v4763_v23 = vpop.f32.mrb[7].mxu0  ;;  %4140 = vst.msk [vmem:[%s241_s23 + $0x18] sm:$0xff] %vm4136_vm2, %v4132_v12  ;;  %v4805_v24 = vpop.f32.mrb[7].mxu1 }
 0x286   : > { %5222 = shalt.err (!%p5219_p12)
}
 0x287   : > { %s5223_s9 = scalar_lea.hbm %s5809_s11, 512  ;;  %s5227_s15 = scalar_lea.hbm %s5889_s3, 4096 }
 0x288   : > { %p5224_p0 = scmp.ne.s32.totalorder %s5809_s11, %s5223_s9  ;;  %p5228_p11 = scmp.lt.u32.totalorder %s5809_s11, %s5889_s3 }
 0x289   : > { %p5229_p13 = scmp.lt.u32.totalorder %s5227_s15, %s5223_s9  ;;  %p5231_p3 = scmp.lt.u32.totalorder %s5223_s9, %s5809_s11 }
 0x28a   : > { %p5225_p5 = pnand %p5224_p0, %p5906_p4 }
 0x28b   : > { %p5230_p7 = por %p5229_p13, %p5228_p11 }
 0x28c   : > { %p5226_p9 = pneg %p5225_p5 }
 0x28d   : > { %p5232_p1 = por %p5231_p3, %p5230_p7 }
 0x28f   : > { %p5233_p2 = pnand %p5232_p1, %p5226_p9 }
 0x291   : > { %5236 = shalt.err (!%p5233_p2)
}
 0x292   : > { %s5356_s30 = smov 128   ;;  %s5357_s25 = smov 8  }
 0x293   : > { %5056 = dma.vmem_to_hbm [thread:$0]  (%p5906_p4), %s5804_s26, 512, %s5809_s11, %s5813_s18, %s5356_s30, %s5356_s30, %s5357_s25  }
 0x294 PF: > { %p5067_p8 = scmp.ge.s32.totalorder %s5347_s24, 2  ;;  %s4174_s19 = sand.u32 1, %s5299_s12  }
 0x295   : > { %p5907_p10 = scmp.ne.s32.totalorder %s5903_s7, 0  ;;  %s4175_s20 = scalar_lea.sflag [#allocation4], %s4174_s19 }
 0x297   : > { %p5063_p6 = pnand %p5067_p8, %p5907_p10 }
 0x299   : > { %5294 = dma.done.wait (!%p5063_p6), %s4175_s20, 512  }
 0x29a   : > { %5296 = vsyncadd (!%p5063_p6), %s4175_s20, 4294966784  ;;  %s19_s24 = sadd.s32 1, %s5347_s24   ;;  %s5909_s20 = sld [smem:[#allocation8_spill]] }
 0x29b   : > { %p5842_p12 = scmp.ge.s32.totalorder %s19_s24, 10   ;;  %s5910_s5 = sld [smem:[#allocation9_spill]] }
 0x29c   : > { %s5911_s7 = sld [smem:[#allocation10_spill]]  ;;  %s5912_s23 = sld [smem:[#allocation11_spill]] }
 0x29d   : > { %s5913_s12 = smov %s5303_s13  ;;  %s5914_s13 = smov %s5307_s14 }
 0x29e   : > { %s5915_s14 = smov %s5484_s28  ;;  %s5916_s15 = smov %s5315_s16 }
 0x29f   : > { %s5917_s16 = smov %s5319_s17  ;;  %s5918_s17 = smov %s5481_s8 }
 0x2a0   : > { %s5919_s18 = smov %s5335_s21  ;;  %s5920_s19 = smov %s5339_s22 }
 0x2a1   : > { %s5921_s21 = smov %s5910_s5  ;;  %18 = sbr.rel (!%p5842_p12) target bundleno = 10 (0xa), region = 83 }
 0x2a2   : > { %s5922_s22 = smov %s5911_s7 }
 0x2a8   :  { %4180 = vsyncpa [#allocation3], 1 }
 0x2a9   :  { %4182 = vsyncpa [#allocation3 + $0x1], 1 }
 0x2aa   :  { %4183 = vsyncpa [#allocation4], 1 }
 0x2ab   :  { %4185 = vsyncpa [#allocation4 + $0x1], 1 }

</bundles_post_ra>
